<compile_context>
chip_gen: v6e
topology: v6e:2x2x1
jax: 0.10.0
libtpu: 0.0.40
codegen_flags: <defaults>
</compile_context>

<pallas_src>
import jax
import jax.numpy as jnp
from jax.experimental import pallas as pl
from jax.experimental.pallas import tpu as pltpu

# ---- packed-layer geometry (static) ----------------------------------------
D_IN = 5           # (R, G, B, x, y)
D_OUT = 2          # (gx, gy)
K_H = 64           # hidden width
K_X = 16           # x segment rows: 5 features + 1 ones-row (bias fold) + pad
K_PACK = K_X + 3 * K_H         # 208  (<= 256: one MXU K-tile on v6e/v7x)
M_PACK = 3 * K_H + 8           # 200  (h1 | h2 | h3 | gx,gy + pad)


def _make_kernel(num_chunks: int, chunk_n: int):
    """Kernel for one point tile of num_chunks * chunk_n columns."""

    def kernel(x_ref, wp_ref, b2_ref, b3_ref, b4_ref, o_ref, a_ref):
        # Resident operands (hoisted out of the pass loop).
        wp = wp_ref[...]                                        # (200, 208) bf16
        b2 = jnp.broadcast_to(b2_ref[...], (K_H, chunk_n))      # f32
        b3 = jnp.broadcast_to(b3_ref[...], (K_H, chunk_n))
        b4 = jnp.broadcast_to(b4_ref[...], (D_OUT, chunk_n))

        # Clear the pipeline state (h1/h2/h3 segments of the packed operand).
        a_ref[K_X:, :] = jnp.zeros((3 * K_H, chunk_n), jnp.bfloat16)

        def pass_body(p, carry):
            # Stage-0 input chunk.  In the 3 epilogue passes the read is
            # clamped to the last chunk; its results are never written out.
            col = pl.multiple_of(
                jnp.minimum(p, num_chunks - 1) * chunk_n, 128)
            a_ref[0:K_X, :] = x_ref[:, pl.ds(col, chunk_n)]

            # One fused block-diagonal matmul advances 4 staggered chunks by
            # one layer each (f32 accumulation on the MXU).
            out = jnp.dot(wp, a_ref[...], preferred_element_type=jnp.float32)

            # Per-layer epilogue: bias add (f32), downcast to bf16, then ReLU
            # (ReLU commutes with round-to-nearest, so this halves VALU work).
            h1 = jnp.maximum(out[0:64].astype(jnp.bfloat16), 0)           # b1 folded
            h2 = jnp.maximum((out[64:128] + b2).astype(jnp.bfloat16), 0)
            h3 = jnp.maximum((out[128:192] + b3).astype(jnp.bfloat16), 0)
            y = out[192:194] + b4                                         # f32

            # Rotate pipeline state for the next pass.
            a_ref[K_X:K_X + K_H, :] = h1
            a_ref[K_X + K_H:K_X + 2 * K_H, :] = h2
            a_ref[K_X + 2 * K_H:, :] = h3

            # Pass p emits the final output of chunk p-3.
            @pl.when(p >= 3)
            def _():
                ocol = pl.multiple_of((p - 3) * chunk_n, 128)
                o_ref[:, pl.ds(ocol, chunk_n)] = y.astype(o_ref.dtype)

            return carry

        jax.lax.fori_loop(0, num_chunks + 3, pass_body, 0)

    return kernel


def _pack_weights(params):
    """Block-diagonal packing of all four layers (+ fc1 bias as a column)."""
    wp = jnp.zeros((M_PACK, K_PACK), jnp.float32)
    wp = wp.at[0:64, 0:D_IN].set(params["w1"])
    wp = wp.at[0:64, D_IN:D_IN + 1].set(params["b1"])               # bias-1 fold
    wp = wp.at[64:128, K_X:K_X + K_H].set(params["w2"])
    wp = wp.at[128:192, K_X + K_H:K_X + 2 * K_H].set(params["w3"])
    wp = wp.at[192:194, K_X + 2 * K_H:K_PACK].set(params["w4"])
    return wp.astype(jnp.bfloat16)


def rgb2grad_forward(x, params, *, tile_n=8192, chunk_n=512):
    """x: (N, 5) float32.

    params: PyTorch-layout tensors  w{i}: (out_features, in_features),
                                    b{i}: (out_features, 1).
    Returns (N, 2) float32, matching RGB2Grad.forward in eval mode.
    """
    n, d_in = x.shape
    assert d_in == D_IN
    assert chunk_n % 128 == 0
    assert tile_n % chunk_n == 0

    # Keep >= 2 grid steps when the input allows it: the "parallel" grid axis
    # is what shards point tiles across v7x's two TensorCores.
    n_chunks = -(-n // chunk_n)
    chunks_per_tile = tile_n // chunk_n
    if n_chunks < 2 * chunks_per_tile:
        chunks_per_tile = max(1, -(-n_chunks // 2))
    tile_n = chunks_per_tile * chunk_n
    n_pad = -(-n // tile_n) * tile_n

    # Feature-major, lane-dense bf16 input with a ones-row for the fc1 bias
    # fold.  Cast before transpose/pad to halve the wrapper's HBM traffic.
    x_bf = x.astype(jnp.bfloat16)                                        # (n, 5)
    x_aug = jnp.concatenate([x_bf, jnp.ones((n, 1), jnp.bfloat16)], axis=1)
    x_fm = jnp.pad(x_aug.T, ((0, K_X - (D_IN + 1)), (0, n_pad - n)))     # (16, n_pad)

    wp = _pack_weights(params)
    b2 = params["b2"].astype(jnp.float32)
    b3 = params["b3"].astype(jnp.float32)
    b4 = params["b4"].astype(jnp.float32)

    # Weights/biases: one full block, constant index -> DMA'd once, resident.
    def resident(arr):
        return pl.BlockSpec(arr.shape, lambda i: (0, 0))

    kernel = _make_kernel(chunks_per_tile, chunk_n)

    out_fm = pl.pallas_call(
        kernel,
        out_shape=jax.ShapeDtypeStruct((D_OUT, n_pad), jnp.float32),
        grid=(n_pad // tile_n,),
        in_specs=[
            pl.BlockSpec((K_X, tile_n), lambda i: (0, i)),   # x tile (lane-dense)
            resident(wp), resident(b2), resident(b3), resident(b4),
        ],
        out_specs=pl.BlockSpec((D_OUT, tile_n), lambda i: (0, i)),
        scratch_shapes=[pltpu.VMEM((K_PACK, chunk_n), jnp.bfloat16)],
        compiler_params=pltpu.CompilerParams(
            dimension_semantics=("parallel",),
            vmem_limit_bytes=32 * 1024 * 1024,   # actual use is a few MB/step
        ),
    )(x_fm, wp, b2, b3, b4)

    # Back to module layout (N, 2), dropping the padded columns.
    return out_fm[:, :n].T


def init_params(key):
    """Deterministic synthetic params in PyTorch nn.Linear layout.

    weight: (out_features, in_features); bias stored as (out_features, 1).
    """
    dims = [(5, 64), (64, 64), (64, 64), (64, 2)]
    params = {}
    for idx, (din, dout) in enumerate(dims, start=1):
        key, kw, kb = jax.random.split(key, 3)
        bound = 1.0 / jnp.sqrt(din)  # PyTorch default init scale
        params[f"w{idx}"] = jax.random.uniform(
            kw, (dout, din), jnp.float32, minval=-bound, maxval=bound)
        params[f"b{idx}"] = jax.random.uniform(
            kb, (dout, 1), jnp.float32, minval=-bound, maxval=bound)
    return params


def _reference_forward_f32(x, params):
    h = jnp.maximum(x @ params["w1"].T + params["b1"].T, 0.0)
    h = jnp.maximum(h @ params["w2"].T + params["b2"].T, 0.0)
    h = jnp.maximum(h @ params["w3"].T + params["b3"].T, 0.0)
    return h @ params["w4"].T + params["b4"].T


def _reference_forward_bf16(x, params):
    """Mirror of the kernel numerics: bf16 operands, f32 accumulation,
    fc1 bias folded into the matmul, bf16 downcast before ReLU, f32 output."""
    bf = jnp.bfloat16
    x_aug = jnp.concatenate([x.astype(bf), jnp.ones((x.shape[0], 1), bf)], axis=1)
    w1_aug = jnp.concatenate([params["w1"], params["b1"]], axis=1).astype(bf)
    h = jnp.dot(x_aug, w1_aug.T, preferred_element_type=jnp.float32)
    h = jnp.maximum(h.astype(bf), 0)

    def layer(h, w, b):
        o = jnp.dot(h, w.astype(bf).T, preferred_element_type=jnp.float32) + b.T
        return jnp.maximum(o.astype(bf), 0)

    h = layer(h, params["w2"], params["b2"])
    h = layer(h, params["w3"], params["b3"])
    return jnp.dot(h, params["w4"].astype(bf).T,
                   preferred_element_type=jnp.float32) + params["b4"].T


if __name__ == "__main__":
    key = jax.random.PRNGKey(0)
    key, kx = jax.random.split(key)

    # N points of (R, G, B, x, y); deliberately NOT a tile multiple so the
    # pad-and-slice path is exercised.
    N = 300
    x = jax.random.uniform(kx, (N, D_IN), jnp.float32)
    params = init_params(key)

    # Small tile/chunk: 2-step grid, 2-chunk in-kernel pipeline (5 passes).
    out = rgb2grad_forward(x, params, tile_n=256, chunk_n=128)
    out = jax.block_until_ready(out)
    assert out.shape == (N, D_OUT)

    # Default (production) tiling on the same small input (1 tile, 1 chunk).
    out_default = jax.block_until_ready(rgb2grad_forward(x, params))
    assert out_default.shape == (N, D_OUT)

    ref_bf16 = _reference_forward_bf16(x, params)   # same precision as kernel
    ref_f32 = _reference_forward_f32(x, params)     # full-precision sanity check

    assert jnp.allclose(out, ref_bf16, atol=1e-2, rtol=1e-2), \
        "mismatch vs bf16-consistent JAX reference"
    assert jnp.allclose(out_default, ref_bf16, atol=1e-2, rtol=1e-2), \
        "mismatch (default tiling) vs bf16-consistent JAX reference"
    assert jnp.allclose(out, ref_f32, atol=1e-1, rtol=1e-1), \
        "mismatch vs f32 JAX reference (sanity)"

    print("KERNEL_OK")
</pallas_src>

<mosaic_0001>
module attributes {stable_mosaic.version = 11 : i64} {
  func.func @kernel(%arg0: i32, %arg1: memref<16x256xbf16, #tpu.memory_space<vmem>>, %arg2: memref<200x208xbf16, #tpu.memory_space<vmem>>, %arg3: memref<64x1xf32, #tpu.memory_space<vmem>>, %arg4: memref<64x1xf32, #tpu.memory_space<vmem>>, %arg5: memref<2x1xf32, #tpu.memory_space<vmem>>, %arg6: memref<2x256xf32, #tpu.memory_space<vmem>>, %arg7: memref<208x128xbf16, #tpu.memory_space<vmem>>) attributes {dimension_semantics = [#tpu.dimension_semantics<parallel>], iteration_bounds = array<i64: 2>, scalar_prefetch = 0 : i64, scratch_operands = 1 : i64, tpu.core_type = #tpu.core_type<tc>, window_params = [{transform_indices = @transform_0, window_bounds = array<i64: 16, 256>}, {pipeline_mode = #tpu.pipeline_mode<synchronous>, transform_indices = @transform_1, window_bounds = array<i64: 200, 208>}, {pipeline_mode = #tpu.pipeline_mode<synchronous>, transform_indices = @transform_2, window_bounds = array<i64: 64, 1>}, {pipeline_mode = #tpu.pipeline_mode<synchronous>, transform_indices = @transform_3, window_bounds = array<i64: 64, 1>}, {pipeline_mode = #tpu.pipeline_mode<synchronous>, transform_indices = @transform_4, window_bounds = array<i64: 2, 1>}, {transform_indices = @transform_5, window_bounds = array<i64: 2, 256>}]} {
    %c0 = arith.constant 0 : index
    %c0_0 = arith.constant 0 : index
    %0 = vector.load %arg2[%c0, %c0_0] : memref<200x208xbf16, #tpu.memory_space<vmem>>, vector<200x208xbf16>
    %c0_1 = arith.constant 0 : index
    %c0_2 = arith.constant 0 : index
    %1 = vector.load %arg3[%c0_1, %c0_2] : memref<64x1xf32, #tpu.memory_space<vmem>>, vector<64x1xf32>
    %2 = vector.shape_cast %1 : vector<64x1xf32> to vector<64x1xf32>
    %3 = vector.broadcast %2 : vector<64x1xf32> to vector<64x128xf32>
    %c0_3 = arith.constant 0 : index
    %c0_4 = arith.constant 0 : index
    %4 = vector.load %arg4[%c0_3, %c0_4] : memref<64x1xf32, #tpu.memory_space<vmem>>, vector<64x1xf32>
    %5 = vector.shape_cast %4 : vector<64x1xf32> to vector<64x1xf32>
    %6 = vector.broadcast %5 : vector<64x1xf32> to vector<64x128xf32>
    %c0_5 = arith.constant 0 : index
    %c0_6 = arith.constant 0 : index
    %7 = vector.load %arg5[%c0_5, %c0_6] : memref<2x1xf32, #tpu.memory_space<vmem>>, vector<2x1xf32>
    %8 = vector.shape_cast %7 : vector<2x1xf32> to vector<2x1xf32>
    %9 = vector.broadcast %8 : vector<2x1xf32> to vector<2x128xf32>
    %cst = arith.constant 0.000000e+00 : bf16
    %10 = vector.broadcast %cst : bf16 to vector<192x128xbf16>
    %c16 = arith.constant 16 : index
    %c0_7 = arith.constant 0 : index
    %11 = vector.load %arg7[%c16, %c0_7] : memref<208x128xbf16, #tpu.memory_space<vmem>>, vector<192x128xbf16>
    tpu.vector_store %arg7[%c16, %c0_7], %10 {strides = array<i32>} : memref<208x128xbf16, #tpu.memory_space<vmem>>, vector<192x128xbf16>,
    %c0_i32 = arith.constant 0 : i32
    %c5_i32 = arith.constant 5 : i32
    %12 = arith.addi %c0_i32, %c5_i32 : i32
    %c1_i32 = arith.constant 1 : i32
    scf.for %arg8 = %c0_i32 to %12 step %c1_i32  : i32 {
      %c1_i32_9 = arith.constant 1 : i32
      %13 = arith.minsi %arg8, %c1_i32_9 : i32
      %c128_i32 = arith.constant 128 : i32
      %14 = arith.muli %13, %c128_i32 : i32
      %15 = tpu.assume_multiple %14, 128 : i32
      %c0_10 = arith.constant 0 : index
      %16 = arith.index_cast %15 : i32 to index
      %17 = vector.load %arg1[%c0_10, %16] : memref<16x256xbf16, #tpu.memory_space<vmem>>, vector<16x128xbf16>
      %c0_11 = arith.constant 0 : index
      %c0_12 = arith.constant 0 : index
      %18 = vector.load %arg7[%c0_11, %c0_12] : memref<208x128xbf16, #tpu.memory_space<vmem>>, vector<16x128xbf16>
      tpu.vector_store %arg7[%c0_11, %c0_12], %17 {strides = array<i32>} : memref<208x128xbf16, #tpu.memory_space<vmem>>, vector<16x128xbf16>,
      %c0_13 = arith.constant 0 : index
      %c0_14 = arith.constant 0 : index
      %19 = vector.load %arg7[%c0_13, %c0_14] : memref<208x128xbf16, #tpu.memory_space<vmem>>, vector<208x128xbf16>
      %cst_15 = arith.constant dense<0.000000e+00> : vector<200x128xf32>
      %20 = tpu.matmul %0, %19, %cst_15 {dimension_numbers = #tpu.dot_dimension_numbers<[1], [0], [0], [1], [0, 0, 1, 1], [], []>} : vector<200x208xbf16>, vector<208x128xbf16>, vector<200x128xf32> -> vector<200x128xf32>
      %21 = vector.extract_strided_slice %20 {offsets = [0, 0], sizes = [64, 128], strides = [1, 1]} : vector<200x128xf32> to vector<64x128xf32>
      %22 = arith.truncf %21 : vector<64x128xf32> to vector<64x128xbf16>
      %cst_16 = arith.constant 0.000000e+00 : bf16
      %23 = vector.broadcast %cst_16 : bf16 to vector<64x128xbf16>
      %24 = arith.maximumf %22, %23 : vector<64x128xbf16>
      %25 = vector.extract_strided_slice %20 {offsets = [64, 0], sizes = [64, 128], strides = [1, 1]} : vector<200x128xf32> to vector<64x128xf32>
      %26 = arith.addf %25, %3 : vector<64x128xf32>
      %27 = arith.truncf %26 : vector<64x128xf32> to vector<64x128xbf16>
      %cst_17 = arith.constant 0.000000e+00 : bf16
      %28 = vector.broadcast %cst_17 : bf16 to vector<64x128xbf16>
      %29 = arith.maximumf %27, %28 : vector<64x128xbf16>
      %30 = vector.extract_strided_slice %20 {offsets = [128, 0], sizes = [64, 128], strides = [1, 1]} : vector<200x128xf32> to vector<64x128xf32>
      %31 = arith.addf %30, %6 : vector<64x128xf32>
      %32 = arith.truncf %31 : vector<64x128xf32> to vector<64x128xbf16>
      %cst_18 = arith.constant 0.000000e+00 : bf16
      %33 = vector.broadcast %cst_18 : bf16 to vector<64x128xbf16>
      %34 = arith.maximumf %32, %33 : vector<64x128xbf16>
      %35 = vector.extract_strided_slice %20 {offsets = [192, 0], sizes = [2, 128], strides = [1, 1]} : vector<200x128xf32> to vector<2x128xf32>
      %36 = arith.addf %35, %9 : vector<2x128xf32>
      %c16_19 = arith.constant 16 : index
      %c0_20 = arith.constant 0 : index
      %37 = vector.load %arg7[%c16_19, %c0_20] : memref<208x128xbf16, #tpu.memory_space<vmem>>, vector<64x128xbf16>
      tpu.vector_store %arg7[%c16_19, %c0_20], %24 {strides = array<i32>} : memref<208x128xbf16, #tpu.memory_space<vmem>>, vector<64x128xbf16>,
      %c80 = arith.constant 80 : index
      %c0_21 = arith.constant 0 : index
      %38 = vector.load %arg7[%c80, %c0_21] : memref<208x128xbf16, #tpu.memory_space<vmem>>, vector<64x128xbf16>
      tpu.vector_store %arg7[%c80, %c0_21], %29 {strides = array<i32>} : memref<208x128xbf16, #tpu.memory_space<vmem>>, vector<64x128xbf16>,
      %c144 = arith.constant 144 : index
      %c0_22 = arith.constant 0 : index
      %39 = vector.load %arg7[%c144, %c0_22] : memref<208x128xbf16, #tpu.memory_space<vmem>>, vector<64x128xbf16>
      tpu.vector_store %arg7[%c144, %c0_22], %34 {strides = array<i32>} : memref<208x128xbf16, #tpu.memory_space<vmem>>, vector<64x128xbf16>,
      %c3_i32 = arith.constant 3 : i32
      %40 = arith.cmpi sge, %arg8, %c3_i32 : i32
      %41 = arith.extui %40 : i1 to i32
      %c0_i32_23 = arith.constant 0 : i32
      %42 = arith.cmpi ne, %41, %c0_i32_23 : i32
      scf.if %42 {
        %c3_i32_24 = arith.constant 3 : i32
        %43 = arith.subi %arg8, %c3_i32_24 : i32
        %c128_i32_25 = arith.constant 128 : i32
        %44 = arith.muli %43, %c128_i32_25 : i32
        %45 = tpu.assume_multiple %44, 128 : i32
        %c0_26 = arith.constant 0 : index
        %46 = arith.index_cast %45 : i32 to index
        %47 = vector.load %arg6[%c0_26, %46] : memref<2x256xf32, #tpu.memory_space<vmem>>, vector<2x128xf32>
        tpu.vector_store %arg6[%c0_26, %46], %36 {strides = array<i32>} : memref<2x256xf32, #tpu.memory_space<vmem>>, vector<2x128xf32>,
      } else {
      }
    }
    %c5_i32_8 = arith.constant 5 : i32
    return
  }
  func.func @transform_0(%arg0: i32) -> (i32, i32) {
    %c0_i32 = arith.constant 0 : i32
    %c0_i32_0 = arith.constant 0 : i32
    return %c0_i32, %arg0 : i32, i32
  }
  func.func @transform_1(%arg0: i32) -> (i32, i32) {
    %c0_i32 = arith.constant 0 : i32
    %c0_i32_0 = arith.constant 0 : i32
    %c0_i32_1 = arith.constant 0 : i32
    return %c0_i32, %c0_i32_0 : i32, i32
  }
  func.func @transform_2(%arg0: i32) -> (i32, i32) {
    %c0_i32 = arith.constant 0 : i32
    %c0_i32_0 = arith.constant 0 : i32
    %c0_i32_1 = arith.constant 0 : i32
    return %c0_i32, %c0_i32_0 : i32, i32
  }
  func.func @transform_3(%arg0: i32) -> (i32, i32) {
    %c0_i32 = arith.constant 0 : i32
    %c0_i32_0 = arith.constant 0 : i32
    %c0_i32_1 = arith.constant 0 : i32
    return %c0_i32, %c0_i32_0 : i32, i32
  }
  func.func @transform_4(%arg0: i32) -> (i32, i32) {
    %c0_i32 = arith.constant 0 : i32
    %c0_i32_0 = arith.constant 0 : i32
    %c0_i32_1 = arith.constant 0 : i32
    return %c0_i32, %c0_i32_0 : i32, i32
  }
  func.func @transform_5(%arg0: i32) -> (i32, i32) {
    %c0_i32 = arith.constant 0 : i32
    %c0_i32_0 = arith.constant 0 : i32
    return %c0_i32, %arg0 : i32, i32
  }
}

</mosaic_0001>

<bundles_post_ra>
// kernel: tpu_custom_call.1
= control target key start
LH: loop header
LB: loop body
LE: loop exit
PB: predicated region body
PF: predicated region fallthrough
CT: control target
= control target key end

     0   :  { %10 = vsyncpa [#allocation5], 0  ;;  %s1838_s0 = inlined_call_operand.vmem [shape: bf16[16,512], index: 0, kind: input, shape index: {}]   ;;  %s1839_s1 = inlined_call_operand.hbm [shape: bf16[200,208], index: 1, kind: input, shape index: {}]   ;;  %s1840_s2 = inlined_call_operand.vmem [shape: f32[64,1], index: 2, kind: input, shape index: {}]   ;;  %s1841_s3 = inlined_call_operand.vmem [shape: f32[64,1], index: 3, kind: input, shape index: {}]   ;;  %s1842_s4 = inlined_call_operand.vmem [shape: f32[2,1], index: 4, kind: input, shape index: {}]   ;;  %s1843_s5 = inlined_call_operand.hbm [shape: f32[2,512], index: 5, kind: output, shape index: {}]  }
   0x1   :  { %11 = vsyncpa [#allocation6], 0 }
   0x2   :  { %13 = vsyncpa [#allocation6 + $0x1], 0  ;;  %s1443_s18 = smov 0   ;;  %s1445_s19 = smov 0  }
   0x3   :  { %s1447_s20 = smov 0   ;;  %s1449_s21 = smov 0  }
   0x4 LB: > { %s1464_s22 = sadd.s32 4294967295, %s1401_s21   ;;  %s1104_s23 = sadd.s32 4294967294, %s1401_s21   ;;  %s1401_s21 = sphi %s1449_s21, %s1854_s21   ;;  %s1397_s20 = sphi %s1447_s20, %s1853_s20   ;;  %s1393_s19 = sphi %s1445_s19, %s1852_s19   ;;  %s1389_s18 = sphi %s1443_s18, %s1851_s18  }
   0x5   : > { %s1468_s24 = sadd.s32 1, %s1401_s21   ;;  %s26_s25 = sadd.s32 1, %s1397_s20 }
   0x6   : > { %s23_s26 = ssub.s32 %s1401_s21, %s1468_s24  ;;  %p33_p0 = scmp.ne.s32.totalorder %s1397_s20, %s1393_s19 }
   0x7   : > { %p24_p1 = scmp.eq.s32.totalorder %s23_s26, 0  ;;  %p34_p2 = scmp.eq.s32.totalorder %s1401_s21, 0 }
   0x8   : > { %p147_p3 = scmp.eq.s32.totalorder %s1464_s22, 1  ;;  %p152_p4 = scmp.ne.s32.totalorder %s1393_s19, %s1389_s18 }
   0x9   : > { %s1480_s27 = scalar_select %p24_p1, %s1397_s20, %s26_s25  }
   0xa   : > { %p1482_p5 = por %p34_p2, %p33_p0  ;;  %p1486_p6 = por %p147_p3, %p33_p0 }
   0xb   : > { %p153_p7 = scmp.eq.s32.totalorder %s1104_s23, 1  ;;  %p1105_p8 = scmp.ge.s32.totalorder %s1401_s21, 1 }
   0xc   : > { %s1846_s29 = scalar_select %p1486_p6, 1, 0 }
   0xd   : > { %p160_p9 = scmp.lt.s32.totalorder %s1401_s21, 3  ;;  %p1492_p10 = por %p153_p7, %p152_p4 }
   0xe   : > { %p1244_p11 = scmp.eq.s32.totalorder %s1464_s22, 0  ;;  %s1407_s7 = smov [#allocation4]  }
   0xf   : > { %s1847_s30 = scalar_select %p1492_p10, 1, 0 }
  0x10   : > { %p1497_p12 = pnand %p1105_p8, %p160_p9  ;;  %s172_s8 = sshll.u32 %s1407_s7, 4  ;;  %s173_s8 = int_to_ptr.vmem [resolvable:$true] %s172_s8 }
  0x11   : > { %s1318_s9 = scalar_lea.vmem %s173_s8, 3200  ;;  %p1326_p7 = scmp.lt.s32.totalorder %s173_s8, %s173_s8 }
  0x12   : > { %p1236_p13 = pneg %p1497_p12  ;;  %p1319_p2 = scmp.ne.s32.totalorder %s173_s8, %s1318_s9 }
  0x13   : > { %p1327_p10 = scmp.lt.s32.totalorder %s1318_s9, %s1318_s9 }
  0x14   : > { %p1237_p0 = pnand %p1244_p11, %p1236_p13 }
  0x15   : > { %p1328_p6 = por %p1327_p10, %p1326_p7 }
  0x16   : > { %p1309_p1 = pneg %p1237_p0 }
  0x18   : > { %p1321_p3 = pnand %p1319_p2, %p1309_p1 }
  0x1a   : > { %p1322_p4 = pneg %p1321_p3 }
  0x1c   : > { %p1329_p8 = pnand %p1328_p6, %p1322_p4 }
  0x1e   : > { %1332 = shalt.err (!%p1329_p8)
}
  0x1f   : > { %s1408_s10 = smov 128   ;;  %s1409_s11 = smov 8  }
  0x20   : > { %1239 = dma.hbm_to_vmem [thread:$0]  (!%p1237_p0), %s1839_s1, 3200, %s173_s8, [#allocation5], %s1408_s10, %s1408_s10, %s1409_s11  }
  0x21   : > { %p1107_p9 = scmp.ge.s32.totalorder %s1401_s21, 2 }
  0x23   : > { %191 = sbr.rel (%p1107_p9) target bundleno = 45 (0x2d), region = 32 }
  0x28   : > { %194 = sbr.rel (!%p1482_p5) target bundleno = 45 (0x2d), region = 36  ;;  %s196_s14 = sand.u32 (%p1482_p5), 1, %s1397_s20  }
  0x29   : > { %s1202_s15 = sshll.u32 (%p1482_p5), %s1401_s21, 3  ;;  %s1108_s16 = sshll.u32 (%p1482_p5), %s196_s14, 4 }
  0x2a   : > { %s201_s25 = scalar_lea.vmem (%p1482_p5), %s1838_s0, %s1202_s15  ;;  %s198_s26 = scalar_lea.vmem (%p1482_p5), [#allocation3], %s1108_s16 }
  0x2b   : > { %v232_v0 = vld [vmem:[%s201_s25] sm:$0xff] (%p1482_p5)  ;;  %v234_v1 = vld [vmem:[%s201_s25 + $0x10] sm:$0xff] (%p1482_p5) }
  0x2c   : > { %233 = vst [vmem:[%s198_s26] sm:$0xff] (%p1482_p5), %v232_v0  ;;  %235 = vst [vmem:[%s198_s26 + $0x8] sm:$0xff] (%p1482_p5), %v234_v1 }
  0x2d PF: > { %244 = sbr.rel (%p1497_p12) target bundleno = 556 (0x22c), region = 74  ;;  %s1521_s28 = sand.u32 (!%p1497_p12), 1, %s1393_s19  }
  0x2e   : > { %s1112_s7 = sshll.u32 (!%p1497_p12), %s1521_s28, 4 }
  0x2f   : > { %s1524_s8 = scalar_lea.vmem (!%p1497_p12), [#allocation3], %s1112_s7 }
  0x32   : > { %1380 = dma.done.wait (%p1244_p11), [#allocation5], 3200  }
  0x33   : > { %1382 = vsyncadd (%p1244_p11), [#allocation5], 4294964096  ;;  %v1410_v2 = vmov 0   ;;  %v1530_v3 = vld [vmem:[#allocation4] sm:$0xff]  ;;  %v1532_v4 = vld [vmem:[#allocation4 + $0x8] sm:$0xff]  ;;  %s1114_s12 = sshll.u32 %s1521_s28, 2 }
  0x34   : > { %1293 = vset.pattern.permute.xlu1 %v1410_v2  ;;  %408 = vst [vmem:[#allocation2 + $0x8] sm:$0xf] %v1410_v2  ;;  %409 = vst [vmem:[#allocation2 + $0xc] sm:$0xf] %v1410_v2  ;;  %1292 = vset.pattern.permute.xlu0 %v1410_v2  ;;  %v1534_v5 = vld [vmem:[#allocation4 + $0x10] sm:$0xff]  ;;  %v1536_v6 = vld [vmem:[#allocation4 + $0x18] sm:$0xff] }
  0x35   : > { %410 = vst [vmem:[#allocation2 + $0x10] sm:$0xf] %v1410_v2  ;;  %411 = vst [vmem:[#allocation2 + $0x14] sm:$0xf] %v1410_v2  ;;  %v1538_v7 = vld [vmem:[#allocation4 + $0x20] sm:$0xff]  ;;  %v1540_v8 = vld [vmem:[#allocation4 + $0x28] sm:$0xff] }
  0x36   : > { %412 = vst [vmem:[#allocation2 + $0x18] sm:$0xf] %v1410_v2  ;;  %413 = vst [vmem:[#allocation2 + $0x1c] sm:$0xf] %v1410_v2  ;;  %v1542_v9 = vld [vmem:[#allocation4 + $0x30] sm:$0xff]  ;;  %v1544_v10 = vld [vmem:[#allocation4 + $0x38] sm:$0xff] }
  0x37   : > { %414 = vst [vmem:[#allocation2 + $0x20] sm:$0xf] %v1410_v2  ;;  %415 = vst [vmem:[#allocation2 + $0x24] sm:$0xf] %v1410_v2  ;;  %v1546_v11 = vld [vmem:[#allocation4 + $0x40] sm:$0xff]  ;;  %v1548_v12 = vld [vmem:[#allocation4 + $0x48] sm:$0xff] }
  0x38   : > { %416 = vst [vmem:[#allocation2 + $0x28] sm:$0xf] %v1410_v2  ;;  %417 = vst [vmem:[#allocation2 + $0x2c] sm:$0xf] %v1410_v2  ;;  %v1550_v13 = vld [vmem:[#allocation4 + $0x50] sm:$0xff]  ;;  %v1552_v14 = vld [vmem:[#allocation4 + $0x58] sm:$0xff] }
  0x39   : > { %418 = vst [vmem:[#allocation2 + $0x30] sm:$0xf] %v1410_v2  ;;  %419 = vst [vmem:[#allocation2 + $0x34] sm:$0xf] %v1410_v2  ;;  %v1554_v15 = vld [vmem:[#allocation4 + $0x60] sm:$0xff]  ;;  %v1556_v16 = vld [vmem:[#allocation4 + $0x68] sm:$0xff] }
  0x3a   : > { %420 = vst [vmem:[#allocation2 + $0x38] sm:$0xf] %v1410_v2  ;;  %421 = vst [vmem:[#allocation2 + $0x3c] sm:$0xf] %v1410_v2  ;;  %v1558_v17 = vld [vmem:[#allocation4 + $0x70] sm:$0xff]  ;;  %v1560_v18 = vld [vmem:[#allocation4 + $0x78] sm:$0xff] }
  0x3b   : > { %422 = vst [vmem:[#allocation2 + $0x40] sm:$0xf] %v1410_v2  ;;  %423 = vst [vmem:[#allocation2 + $0x44] sm:$0xf] %v1410_v2  ;;  %v1562_v19 = vld [vmem:[#allocation4 + $0x80] sm:$0xff]  ;;  %v1564_v20 = vld [vmem:[#allocation4 + $0x88] sm:$0xff] }
  0x3c   : > { %424 = vst [vmem:[#allocation2 + $0x48] sm:$0xf] %v1410_v2  ;;  %425 = vst [vmem:[#allocation2 + $0x4c] sm:$0xf] %v1410_v2  ;;  %v1566_v21 = vld [vmem:[#allocation4 + $0x90] sm:$0xff]  ;;  %v1568_v22 = vld [vmem:[#allocation4 + $0x98] sm:$0xff] }
  0x3d   : > { %426 = vst [vmem:[#allocation2 + $0x50] sm:$0xf] %v1410_v2  ;;  %427 = vst [vmem:[#allocation2 + $0x54] sm:$0xf] %v1410_v2  ;;  %v1570_v23 = vld [vmem:[#allocation4 + $0xa0] sm:$0xff]  ;;  %v1572_v24 = vld [vmem:[#allocation4 + $0xa8] sm:$0xff] }
  0x3e   : > { %428 = vst [vmem:[#allocation2 + $0x58] sm:$0xf] %v1410_v2  ;;  %429 = vst [vmem:[#allocation2 + $0x5c] sm:$0xf] %v1410_v2  ;;  %v1574_v25 = vld [vmem:[#allocation4 + $0xb0] sm:$0xff]  ;;  %v1576_v26 = vld [vmem:[#allocation4 + $0xb8] sm:$0xff] }
  0x3f   : > { %430 = vst [vmem:[#allocation2 + $0x60] sm:$0xf] %v1410_v2  ;;  %431 = vst [vmem:[#allocation2 + $0x64] sm:$0xf] %v1410_v2  ;;  %v1578_v27 = vld [vmem:[#allocation4 + $0xc0] sm:$0xff]  ;;  %v308_v28 = vld [vmem:[%s1840_s2 + $0x10] sm:$0xff] }
  0x40   : > { %v306_v29 = vld [vmem:[%s1840_s2] sm:$0xff]  ;;  %326 = vperm.xlu1 %1293, %v308_v28   ;;  %v309_v30 = vld [vmem:[%s1840_s2 + $0x18] sm:$0xff]  ;;  %v307_v31 = vld [vmem:[%s1840_s2 + $0x8] sm:$0xff]  ;;  %s1666_s15 = scalar_lea.vmem [#allocation7], %s1114_s12  ;;  %s1668_s16 = smov 0  }
  0x41   : > { %316 = vperm.xlu0 %1292, %v306_v29   ;;  %v311_v32 = vld [vmem:[%s1840_s2 + $0x28] sm:$0xff]  ;;  %v310_v33 = vld [vmem:[%s1840_s2 + $0x20] sm:$0xff]  ;;  %v313_v34 = vld [vmem:[%s1840_s2 + $0x38] sm:$0xff] }
  0x42   : > { %v312_v35 = vld [vmem:[%s1840_s2 + $0x30] sm:$0xff]  ;;  %v355_v36 = vld [vmem:[%s1841_s3 + $0x8] sm:$0xff]  ;;  %v354_v37 = vld [vmem:[%s1841_s3] sm:$0xff] }
  0x43   : > { %v357_v38 = vld [vmem:[%s1841_s3 + $0x18] sm:$0xff]  ;;  %v356_v39 = vld [vmem:[%s1841_s3 + $0x10] sm:$0xff]  ;;  %v359_v40 = vld [vmem:[%s1841_s3 + $0x28] sm:$0xff] }
  0x44   : > { %331 = vperm.xlu1 %1293, %v309_v30   ;;  %v358_v41 = vld [vmem:[%s1841_s3 + $0x20] sm:$0xff]  ;;  %v361_v42 = vld [vmem:[%s1841_s3 + $0x38] sm:$0xff]  ;;  %v360_v43 = vld [vmem:[%s1841_s3 + $0x30] sm:$0xff] }
  0x45   : > { %321 = vperm.xlu0 %1292, %v307_v31   ;;  %v402_v44 = vld [vmem:[%s1842_s4] sm:$0x3] }
  0x48   : > { %341 = vperm.xlu1 %1293, %v311_v32  }
  0x49   : > { %336 = vperm.xlu0 %1292, %v310_v33  }
  0x4c   : > { %351 = vperm.xlu1 %1293, %v313_v34  }
  0x4d   : > { %346 = vperm.xlu0 %1292, %v312_v35  }
  0x50   : > { %369 = vperm.xlu1 %1293, %v355_v36  }
  0x51   : > { %364 = vperm.xlu0 %1292, %v354_v37  }
  0x54   : > { %379 = vperm.xlu1 %1293, %v357_v38  }
  0x55   : > { %374 = vperm.xlu0 %1292, %v356_v39  }
  0x58   : > { %389 = vperm.xlu1 %1293, %v359_v40  }
  0x59   : > { %384 = vperm.xlu0 %1292, %v358_v41  }
  0x5c   : > { %399 = vperm.xlu1 %1293, %v361_v42  }
  0x5d   : > { %394 = vperm.xlu0 %1292, %v360_v43  }
  0x61   : > { %405 = vperm.xlu0 %1292, %v402_v44  }
  0xbb   : > { %v1632_v45 = vpop.permute.xlu1 %326 }
  0xbc   : > { %v1634_v46 = vpop.permute.xlu0 %316 }
  0xbf   : > { %v1636_v47 = vpop.permute.xlu1 %331 }
  0xc0   : > { %v1638_v48 = vpop.permute.xlu0 %321 }
  0xc3   : > { %v1640_v49 = vpop.permute.xlu1 %341 }
  0xc4   : > { %v1642_v50 = vpop.permute.xlu0 %336 }
  0xc7   : > { %v1644_v51 = vpop.permute.xlu1 %351 }
  0xc8   : > { %v1646_v52 = vpop.permute.xlu0 %346 }
  0xcb   : > { %v1648_v53 = vpop.permute.xlu1 %369 }
  0xcc   : > { %v1650_v54 = vpop.permute.xlu0 %364 }
  0xcf   : > { %v1652_v55 = vpop.permute.xlu1 %379 }
  0xd0   : > { %v1654_v56 = vpop.permute.xlu0 %374 }
  0xd3   : > { %v1656_v57 = vpop.permute.xlu1 %389 }
  0xd4   : > { %v1658_v58 = vpop.permute.xlu0 %384 }
  0xd7   : > { %v1660_v59 = vpop.permute.xlu1 %399 }
  0xd8   : > { %v1662_v60 = vpop.permute.xlu0 %394 }
  0xdc   : > { %v1664_v61 = vpop.permute.xlu0 %405 }
  0xdd LB: >> { %v1294_v62 = vld [vmem:[#allocation2 + $0x38] sm:$0xff]   ;;  %v1118_v63 = vcombine.high %v1530_v3, %v1532_v4  ;;  %v1411_v0 = vmov 0   ;;  %vm667_vm0 = vcmask 654336   ;;  %v1132_v1 = vcombine.high %v1558_v17, %v1560_v18  ;;  %v1295_v2 = vld [vmem:[#allocation2 + $0x30] sm:$0xff]   ;;  %p438_p5 = scmp.lt.s32.totalorder %s1405_s16, 1  ;;  %v1296_v28 = vld [vmem:[#allocation2 + $0x28] sm:$0xff]   ;;  %s1405_s16 = sphi %s1668_s16, %s437_s16  }
  0xde   : >> { %707 = vmatprep.subr.bf16.mxu0 %v1411_v0  ;;  %1204 = vmatprep.subr.bf16.mxu1 %v1411_v0  ;;  %v1297_v29 = vld [vmem:[#allocation2 + $0x20] sm:$0xff]   ;;  %v1298_v32 = vld [vmem:[#allocation2 + $0x18] sm:$0xff]   ;;  %v1299_v33 = vld [vmem:[#allocation2 + $0x10] sm:$0xff]   ;;  %v1117_v41 = vcombine.low %v1530_v3, %v1532_v4  ;;  %v1131_v42 = vcombine.low %v1558_v17, %v1560_v18  ;;  %v1120_v43 = vcombine.high %v1534_v5, %v1536_v6  ;;  %p1193_p6 = scmp.lt.s32.totalorder %s1405_s16, 3 }
  0xdf   : >> { %708 = vmatpush1.bf16.msra.mxu0 %v1294_v62  ;;  %1217 = vmatpush1.bf16.msra.mxu1 %v1294_v62  ;;  %s439_s17 = scalar_select %p438_p5, %s1405_s16, 1  ;;  %v1300_v34 = vld [vmem:[#allocation2 + $0x8] sm:$0xff]   ;;  %v1302_v36 = vld [vmem:[#allocation2 + $0x60] sm:$0xff]   ;;  %v1303_v37 = vld [vmem:[#allocation2 + $0x58] sm:$0xff]   ;;  %v1134_v44 = vcombine.high %v1562_v19, %v1564_v20  ;;  %v1119_v62 = vcombine.low %v1534_v5, %v1536_v6 }
  0xe0   : >> { %709 = vmatprep.subr.bf16.mxu0 %v1411_v0  ;;  %1205 = vmatprep.subr.bf16.mxu1 %v1411_v0  ;;  %v1304_v38 = vld [vmem:[#allocation2 + $0x50] sm:$0xff]   ;;  %v1305_v39 = vld [vmem:[#allocation2 + $0x48] sm:$0xff]   ;;  %v1306_v40 = vld [vmem:[#allocation2 + $0x40] sm:$0xff]   ;;  %s1194_s6 = sadd.s32 (!%p1193_p6), 4294967293, %s1405_s16 }
  0xe1   : >> { %1156 = vmatprep.mubr.msk.bf16.mxu0 %vm667_vm0, %v1118_v63  ;;  %1163 = vmatprep.mubr.msk.bf16.mxu1 %vm667_vm0, %v1132_v1  ;;  %s1115_s23 = sshll.u32 %s439_s17, 7  ;;  %v1133_v63 = vcombine.low %v1562_v19, %v1564_v20  ;;  %v1122_v1 = vcombine.high %v1538_v7, %v1540_v8  ;;  %s1195_s9 = sshll.u32 (!%p1193_p6), %s1194_s6, 7 }
  0xe2   : >> { %s441_s25 = sshra.s32 %s1115_s23, 7  ;;  %s998_s10 = sshra.s32 (!%p1193_p6), %s1195_s9, 7 }
  0xe3   : >> { %710 = vmatpush1.bf16.msra.mxu0 %v1295_v2  ;;  %1218 = vmatpush1.bf16.msra.mxu1 %v1295_v2  ;;  %s1116_s26 = sshll.u32 %s441_s25, 2  ;;  %v1136_v2 = vcombine.high %v1566_v21, %v1568_v22  ;;  %s1196_s11 = sshll.u32 (!%p1193_p6), %s998_s10, 1 }
  0xe4   : >> { %711 = vmatprep.subr.bf16.mxu0 %v1411_v0  ;;  %1206 = vmatprep.subr.bf16.mxu1 %v1411_v0  ;;  %s444_s7 = scalar_lea.vmem %s1524_s8, %s1116_s26 [#allocation3]  ;;  %s1001_s12 = scalar_lea.vmem (!%p1193_p6), %s1666_s15, %s1196_s11 [#allocation7] }
  0xe5   : >> { %v445_v30 = vld [vmem:[%s444_s7] sm:$0xf]  ;;  %v446_v31 = vld [vmem:[%s444_s7 + $0x8] sm:$0xf] }
  0xe6   : >> { %447 = vst [vmem:[#allocation2] sm:$0xf] %v445_v30  ;;  %448 = vst [vmem:[#allocation2 + $0x4] sm:$0xf] %v446_v31  ;;  %v1124_v30 = vcombine.high %v1542_v9, %v1544_v10  ;;  %v1138_v31 = vcombine.high %v1570_v23, %v1572_v24 }
  0xe7   : >> { %712 = vmatpush1.bf16.msra.mxu0 %v1296_v28  ;;  %1219 = vmatpush1.bf16.msra.mxu1 %v1296_v28  ;;  %v1121_v28 = vcombine.low %v1538_v7, %v1540_v8 }
  0xe8   : >> { %713 = vmatprep.subr.bf16.mxu0 %v1411_v0  ;;  %1207 = vmatprep.subr.bf16.mxu1 %v1411_v0 }
  0xeb   : >> { %714 = vmatpush1.bf16.msra.mxu0 %v1297_v29  ;;  %1220 = vmatpush1.bf16.msra.mxu1 %v1297_v29  ;;  %v1135_v29 = vcombine.low %v1566_v21, %v1568_v22 }
  0xec   : >> { %715 = vmatprep.subr.bf16.mxu0 %v1411_v0  ;;  %1208 = vmatprep.subr.bf16.mxu1 %v1411_v0 }
  0xed   : >> { %v1301_v35 = vld [vmem:[#allocation2] sm:$0xff]  }
  0xef   : >> { %716 = vmatpush1.bf16.msra.mxu0 %v1298_v32  ;;  %1221 = vmatpush1.bf16.msra.mxu1 %v1298_v32  ;;  %v1123_v32 = vcombine.low %v1542_v9, %v1544_v10 }
  0xf0   : >> { %717 = vmatprep.subr.bf16.mxu0 %v1411_v0  ;;  %1209 = vmatprep.subr.bf16.mxu1 %v1411_v0 }
  0xf3   : >> { %718 = vmatpush1.bf16.msra.mxu0 %v1299_v33  ;;  %1222 = vmatpush1.bf16.msra.mxu1 %v1299_v33  ;;  %v1137_v33 = vcombine.low %v1570_v23, %v1572_v24 }
  0xf4   : >> { %719 = vmatprep.subr.bf16.mxu0 %v1411_v0  ;;  %1210 = vmatprep.subr.bf16.mxu1 %v1411_v0 }
  0xf7   : >> { %720 = vmatpush1.bf16.msra.mxu0 %v1300_v34  ;;  %1223 = vmatpush1.bf16.msra.mxu1 %v1300_v34  ;;  %v1126_v34 = vcombine.high %v1546_v11, %v1548_v12 }
  0xf8   : >> { %721 = vmatprep.subr.bf16.mxu0 %v1411_v0  ;;  %1211 = vmatprep.subr.bf16.mxu1 %v1411_v0 }
  0xfb   : >> { %722 = vmatpush1.bf16.msra.mxu0 %v1301_v35  ;;  %1224 = vmatpush1.bf16.msra.mxu1 %v1301_v35  ;;  %v1140_v35 = vcombine.high %v1574_v25, %v1576_v26 }
  0xfc   : >> { %729 = vmatprep.subr.bf16.mxu0 %v1411_v0  ;;  %1212 = vmatprep.subr.bf16.mxu1 %v1411_v0 }
  0xff   : >> { %730 = vmatpush2.bf16.msra.mxu0 %v1302_v36  ;;  %1225 = vmatpush2.bf16.msra.mxu1 %v1302_v36  ;;  %v1125_v36 = vcombine.low %v1546_v11, %v1548_v12 }
 0x100   : >> { %731 = vmatprep.subr.bf16.mxu0 %v1411_v0  ;;  %1213 = vmatprep.subr.bf16.mxu1 %v1411_v0 }
 0x103   : >> { %732 = vmatpush2.bf16.msra.mxu0 %v1303_v37  ;;  %1226 = vmatpush2.bf16.msra.mxu1 %v1303_v37  ;;  %v1139_v37 = vcombine.low %v1574_v25, %v1576_v26 }
 0x104   : >> { %733 = vmatprep.subr.bf16.mxu0 %v1411_v0  ;;  %1214 = vmatprep.subr.bf16.mxu1 %v1411_v0 }
 0x107   : >> { %734 = vmatpush2.bf16.msra.mxu0 %v1304_v38  ;;  %1227 = vmatpush2.bf16.msra.mxu1 %v1304_v38  ;;  %v1128_v38 = vcombine.high %v1550_v13, %v1552_v14 }
 0x108   : >> { %735 = vmatprep.subr.bf16.mxu0 %v1411_v0  ;;  %1215 = vmatprep.subr.bf16.mxu1 %v1411_v0 }
 0x10b   : >> { %736 = vmatpush2.bf16.msra.mxu0 %v1305_v39  ;;  %1228 = vmatpush2.bf16.msra.mxu1 %v1305_v39  ;;  %v1142_v39 = vcombine.high %v1578_v27, %v1578_v27 }
 0x10c   : >> { %737 = vmatprep.subr.bf16.mxu0 %v1411_v0  ;;  %1216 = vmatprep.subr.bf16.mxu1 %v1411_v0 }
 0x10f   : >> { %738 = vmatpush2.bf16.msra.mxu0 %v1306_v40  ;;  %1229 = vmatpush2.bf16.msra.mxu1 %v1306_v40  ;;  %v1127_v40 = vcombine.low %v1550_v13, %v1552_v14 }
 0x112   : >> { %740 = vmatmul.mubr.bf16.vlgmr.msra.gmra.mxu0 %v1117_v41  ;;  %796 = vmatmul.mubr.bf16.vlgmr.msra.gmra.mxu1 %v1131_v42  ;;  %v1141_v41 = vcombine.low %v1578_v27, %v1578_v27  ;;  %v1130_v42 = vcombine.high %v1554_v15, %v1556_v16 }
 0x113   : >> { %1157 = vmatprep.mubr.msk.bf16.mxu0 %vm667_vm0, %v1120_v43  ;;  %1164 = vmatprep.mubr.msk.bf16.mxu1 %vm667_vm0, %v1134_v44  ;;  %v1129_v43 = vcombine.low %v1554_v15, %v1556_v16 }
 0x11a   : >> { %748 = vmatmul.mubr.bf16.gmra.mxu0 %v1119_v62  ;;  %804 = vmatmul.mubr.bf16.gmra.mxu1 %v1133_v63 }
 0x11b   : >> { %1158 = vmatprep.mubr.msk.bf16.mxu0 %vm667_vm0, %v1122_v1  ;;  %1165 = vmatprep.mubr.msk.bf16.mxu1 %vm667_vm0, %v1136_v2 }
 0x122   : >> { %756 = vmatmul.mubr.bf16.gmra.mxu0 %v1121_v28  ;;  %812 = vmatmul.mubr.bf16.gmra.mxu1 %v1135_v29 }
 0x123   : >> { %1159 = vmatprep.mubr.msk.bf16.mxu0 %vm667_vm0, %v1124_v30  ;;  %1166 = vmatprep.mubr.msk.bf16.mxu1 %vm667_vm0, %v1138_v31 }
 0x12a   : >> { %764 = vmatmul.mubr.bf16.gmra.mxu0 %v1123_v32  ;;  %820 = vmatmul.mubr.bf16.gmra.mxu1 %v1137_v33 }
 0x12b   : >> { %1160 = vmatprep.mubr.msk.bf16.mxu0 %vm667_vm0, %v1126_v34  ;;  %1167 = vmatprep.mubr.msk.bf16.mxu1 %vm667_vm0, %v1140_v35 }
 0x132   : >> { %772 = vmatmul.mubr.bf16.gmra.mxu0 %v1125_v36  ;;  %828 = vmatmul.mubr.bf16.gmra.mxu1 %v1139_v37 }
 0x133   : >> { %1161 = vmatprep.mubr.msk.bf16.mxu0 %vm667_vm0, %v1128_v38  ;;  %1168 = vmatprep.mubr.msk.bf16.mxu1 %vm667_vm0, %v1142_v39 }
 0x13a   : >> { %780 = vmatmul.mubr.bf16.gmra.mxu0 %v1127_v40  ;;  %836 = vmatmul.mubr.bf16.gmra.mxu1 %v1141_v41 }
 0x13b   : >> { %1162 = vmatprep.mubr.msk.bf16.mxu0 %vm667_vm0, %v1130_v42 }
 0x142   : >> { %788 = vmatmul.mubr.bf16.gmra.mxu0 %v1129_v43 }
 0x1d2   : >> { %v741_v44 = vpop.f32.mrf.mxu0  ;;  %v797_v62 = vpop.f32.mrf.mxu1 }
 0x1d3   : >> { %v857_v2 = vadd.f32 %v797_v62, %v1646_v52 }
 0x1d4   : >> { %v743_v63 = vpop.f32.mrf.mxu0  ;;  %v799_v1 = vpop.f32.mrf.mxu1 }
 0x1d6   : >> { %v744_v28 = vpop.f32.mrf.mxu0  ;;  %v800_v29 = vpop.f32.mrf.mxu1 }
 0x1d7   : >> { %v843_v30 = vpack.c.bf16 %v744_v28, %v741_v44  ;;  %v858_v31 = vadd.f32 %v800_v29, %v1644_v51 }
 0x1d8   : >> { %v746_v32 = vpop.f32.mrf.mxu0  ;;  %v802_v33 = vpop.f32.mrf.mxu1 }
 0x1d9   : >> { %v847_v34 = vmax.bf16 %v1411_v0, %v843_v30  ;;  %v862_v35 = vpack.c.bf16 %v858_v31, %v857_v2 }
 0x1da   : >> { %v749_v36 = vpop.f32.mrf.mxu0  ;;  %v805_v37 = vpop.f32.mrf.mxu1 }
 0x1db   : >> { %v1169_v38 = vcombine.low %v847_v34, %v847_v34  ;;  %v1170_v39 = vcombine.high %v847_v34, %v847_v34  ;;  %v866_v40 = vmax.bf16 %v1411_v0, %v862_v35  ;;  %v867_v44 = vadd.f32 %v805_v37, %v1650_v54 }
 0x1dc   : >> { %v751_v41 = vpop.f32.mrf.mxu0  ;;  %v807_v42 = vpop.f32.mrf.mxu1 }
 0x1dd   : >> { %912 = vst [vmem:[#allocation2 + $0x8] sm:$0xf] %v1169_v38  ;;  %913 = vst [vmem:[#allocation2 + $0xc] sm:$0xf] %v1170_v39  ;;  %v1183_v43 = vcombine.low %v866_v40, %v866_v40  ;;  %v1184_v62 = vcombine.high %v866_v40, %v866_v40 }
 0x1de   : >> { %v752_v63 = vpop.f32.mrf.mxu0  ;;  %v808_v1 = vpop.f32.mrf.mxu1 }
 0x1df   : >> { %v844_v28 = vpack.c.bf16 %v752_v63, %v749_v36  ;;  %954 = vst [vmem:[#allocation2 + $0x40] sm:$0xf] %v1183_v43  ;;  %955 = vst [vmem:[#allocation2 + $0x44] sm:$0xf] %v1184_v62  ;;  %v868_v2 = vadd.f32 %v808_v1, %v1648_v53 }
 0x1e0   : >> { %v754_v29 = vpop.f32.mrf.mxu0  ;;  %v810_v30 = vpop.f32.mrf.mxu1 }
 0x1e1   : >> { %v848_v31 = vmax.bf16 %v1411_v0, %v844_v28  ;;  %v875_v32 = vpack.c.bf16 %v868_v2, %v867_v44 }
 0x1e2   : >> { %v757_v33 = vpop.f32.mrf.mxu0  ;;  %v813_v34 = vpop.f32.mrf.mxu1 }
 0x1e3   : >> { %v1171_v35 = vcombine.low %v848_v31, %v848_v31  ;;  %v1172_v38 = vcombine.high %v848_v31, %v848_v31  ;;  %v879_v39 = vmax.bf16 %v1411_v0, %v875_v32  ;;  %v869_v42 = vadd.f32 %v813_v34, %v1654_v56 }
 0x1e4   : >> { %v759_v40 = vpop.f32.mrf.mxu0  ;;  %v815_v37 = vpop.f32.mrf.mxu1 }
 0x1e5   : >> { %914 = vst [vmem:[#allocation2 + $0x10] sm:$0xf] %v1171_v35  ;;  %915 = vst [vmem:[#allocation2 + $0x14] sm:$0xf] %v1172_v38  ;;  %v1185_v36 = vcombine.low %v879_v39, %v879_v39  ;;  %v1186_v41 = vcombine.high %v879_v39, %v879_v39 }
 0x1e6   : >> { %v760_v43 = vpop.f32.mrf.mxu0  ;;  %v816_v62 = vpop.f32.mrf.mxu1 }
 0x1e7   : >> { %v845_v63 = vpack.c.bf16 %v760_v43, %v757_v33  ;;  %984 = vst [vmem:[#allocation2 + $0x48] sm:$0xf] %v1185_v36  ;;  %985 = vst [vmem:[#allocation2 + $0x4c] sm:$0xf] %v1186_v41  ;;  %v870_v44 = vadd.f32 %v816_v62, %v1652_v55 }
 0x1e8   : >> { %v762_v1 = vpop.f32.mrf.mxu0  ;;  %v818_v28 = vpop.f32.mrf.mxu1 }
 0x1e9   : >> { %v849_v2 = vmax.bf16 %v1411_v0, %v845_v63  ;;  %v876_v29 = vpack.c.bf16 %v870_v44, %v869_v42 }
 0x1ea   : >> { %v765_v30 = vpop.f32.mrf.mxu0  ;;  %v821_v31 = vpop.f32.mrf.mxu1 }
 0x1eb   : >> { %v1173_v32 = vcombine.low %v849_v2, %v849_v2  ;;  %v1174_v35 = vcombine.high %v849_v2, %v849_v2  ;;  %v880_v38 = vmax.bf16 %v1411_v0, %v876_v29  ;;  %v871_v37 = vadd.f32 %v821_v31, %v1658_v58 }
 0x1ec   : >> { %v767_v39 = vpop.f32.mrf.mxu0  ;;  %v823_v34 = vpop.f32.mrf.mxu1 }
 0x1ed   : >> { %916 = vst [vmem:[#allocation2 + $0x18] sm:$0xf] %v1173_v32  ;;  %917 = vst [vmem:[#allocation2 + $0x1c] sm:$0xf] %v1174_v35  ;;  %v1187_v33 = vcombine.low %v880_v38, %v880_v38  ;;  %v1188_v40 = vcombine.high %v880_v38, %v880_v38 }
 0x1ee   : >> { %v768_v36 = vpop.f32.mrf.mxu0  ;;  %v824_v41 = vpop.f32.mrf.mxu1 }
 0x1ef   : >> { %v846_v43 = vpack.c.bf16 %v768_v36, %v765_v30  ;;  %986 = vst [vmem:[#allocation2 + $0x50] sm:$0xf] %v1187_v33  ;;  %987 = vst [vmem:[#allocation2 + $0x54] sm:$0xf] %v1188_v40  ;;  %v872_v42 = vadd.f32 %v824_v41, %v1656_v57 }
 0x1f0   : >> { %v770_v62 = vpop.f32.mrf.mxu0  ;;  %v826_v63 = vpop.f32.mrf.mxu1 }
 0x1f1   : >> { %v850_v44 = vmax.bf16 %v1411_v0, %v846_v43  ;;  %v877_v1 = vpack.c.bf16 %v872_v42, %v871_v37 }
 0x1f2   : >> { %v773_v28 = vpop.f32.mrf.mxu0  ;;  %v829_v2 = vpop.f32.mrf.mxu1 }
 0x1f3   : >> { %v1175_v29 = vcombine.low %v850_v44, %v850_v44  ;;  %v1176_v32 = vcombine.high %v850_v44, %v850_v44  ;;  %v881_v35 = vmax.bf16 %v1411_v0, %v877_v1  ;;  %v873_v34 = vadd.f32 %v829_v2, %v1662_v60 }
 0x1f4   : >> { %v775_v38 = vpop.f32.mrf.mxu0  ;;  %v831_v31 = vpop.f32.mrf.mxu1  ;;  %v851_v36 = vadd.f32 %v773_v28, %v1634_v46 }
 0x1f5   : >> { %918 = vst [vmem:[#allocation2 + $0x20] sm:$0xf] %v1175_v29  ;;  %919 = vst [vmem:[#allocation2 + $0x24] sm:$0xf] %v1176_v32  ;;  %v1189_v30 = vcombine.low %v881_v35, %v881_v35  ;;  %v1190_v39 = vcombine.high %v881_v35, %v881_v35 }
 0x1f6   : >> { %v776_v33 = vpop.f32.mrf.mxu0  ;;  %v832_v40 = vpop.f32.mrf.mxu1 }
 0x1f7   : >> { %v852_v37 = vadd.f32 %v776_v33, %v1638_v48  ;;  %988 = vst [vmem:[#allocation2 + $0x58] sm:$0xf] %v1189_v30  ;;  %989 = vst [vmem:[#allocation2 + $0x5c] sm:$0xf] %v1190_v39  ;;  %v874_v41 = vadd.f32 %v832_v40, %v1660_v59 }
 0x1f8   : >> { %v778_v43 = vpop.f32.mrf.mxu0  ;;  %v834_v42 = vpop.f32.mrf.mxu1 }
 0x1f9   : >> { %v859_v62 = vpack.c.bf16 %v852_v37, %v851_v36  ;;  %v878_v63 = vpack.c.bf16 %v874_v41, %v873_v34 }
 0x1fa   : >> { %v781_v44 = vpop.f32.mrf.mxu0  ;;  %v837_v1 = vpop.f32.mrf.mxu1 }
 0x1fb   : >> { %v863_v29 = vmax.bf16 %v1411_v0, %v859_v62  ;;  %v882_v2 = vmax.bf16 %v1411_v0, %v878_v63  ;;  %v883_v32 = vadd.f32 %v837_v1, %v1664_v61  ;;  %v853_v34 = vadd.f32 %v781_v44, %v1632_v45 }
 0x1fc   : >> { %v783_v35 = vpop.f32.mrf.mxu0  ;;  %v839_v28 = vpop.f32.mrf.mxu1 }
 0x1fd   : >> { %v1177_v38 = vcombine.low %v863_v29, %v863_v29  ;;  %v1178_v31 = vcombine.high %v863_v29, %v863_v29  ;;  %v1191_v30 = vcombine.low %v882_v2, %v882_v2  ;;  %v1192_v39 = vcombine.high %v882_v2, %v882_v2 }
 0x1fe   : >> { %v784_v33 = vpop.f32.mrf.mxu0  ;;  %v840_v40 = vpop.f32.mrf.mxu1 }
 0x1ff   : >> { %948 = vst [vmem:[#allocation2 + $0x28] sm:$0xf] %v1177_v38  ;;  %949 = vst [vmem:[#allocation2 + $0x2c] sm:$0xf] %v1178_v31  ;;  %v854_v36 = vadd.f32 %v784_v33, %v1636_v47 }
 0x200   : >> { %990 = vst [vmem:[#allocation2 + $0x60] sm:$0xf] %v1191_v30  ;;  %991 = vst [vmem:[#allocation2 + $0x64] sm:$0xf] %v1192_v39  ;;  %v786_v37 = vpop.f32.mrf.mxu0  ;;  %v841_v41 = vpop.f32.mrf.mxu1 }
 0x201   : >> { %v860_v43 = vpack.c.bf16 %v854_v36, %v853_v34 }
 0x202   : >> { %v789_v42 = vpop.f32.mrf.mxu0 }
 0x203   : >> { %v864_v62 = vmax.bf16 %v1411_v0, %v860_v43  ;;  %v855_v35 = vadd.f32 %v789_v42, %v1642_v50 }
 0x204   : >> { %v791_v63 = vpop.f32.mrf.mxu0 }
 0x205   : >> { %v1179_v1 = vcombine.low %v864_v62, %v864_v62  ;;  %v1180_v29 = vcombine.high %v864_v62, %v864_v62 }
 0x206   : >> { %v792_v2 = vpop.f32.mrf.mxu0 }
 0x207   : >> { %950 = vst [vmem:[#allocation2 + $0x30] sm:$0xf] %v1179_v1  ;;  %951 = vst [vmem:[#allocation2 + $0x34] sm:$0xf] %v1180_v29  ;;  %v856_v44 = vadd.f32 %v792_v2, %v1640_v49 }
 0x208   : >> { %v794_v28 = vpop.f32.mrf.mxu0 }
 0x209   : >> { %v861_v38 = vpack.c.bf16 %v856_v44, %v855_v35 }
 0x20b   : >> { %v865_v31 = vmax.bf16 %v1411_v0, %v861_v38  ;;  %995 = sbr.rel (%p1193_p6) target bundleno = 529 (0x211), region = 93 }
 0x20d   : >> { %v1181_v30 = vcombine.low %v865_v31, %v865_v31  ;;  %v1182_v39 = vcombine.high %v865_v31, %v865_v31 }
 0x20f   : >> { %952 = vst [vmem:[#allocation2 + $0x38] sm:$0xf] %v1181_v30  ;;  %953 = vst [vmem:[#allocation2 + $0x3c] sm:$0xf] %v1182_v39 }
 0x210   : >> { %1002 = vst [vmem:[%s1001_s12] sm:$0x3] %v883_v32 }
 0x211 PF: >> { %s437_s16 = sadd.s32 1, %s1405_s16  }
 0x212   : >> { %p434_p10 = scmp.ge.s32.totalorder %s437_s16, 5  }
 0x213   : > { %s1203_s13 = sshll.u32 (%p434_p10), %s1464_s22, 6  ;;  %s1018_s25 = sshll.u32 (%p434_p10), %s1666_s15, 4  ;;  %s1019_s25 = int_to_ptr.vmem [resolvable:$true] %s1018_s25 }
 0x214   : > { %436 = sbr.rel (!%p434_p10) target bundleno = 221 (0xdd), region = 136  ;;  %s1016_s23 = scalar_lea.hbm (%p434_p10), %s1843_s5, %s1203_s13 }
 0x215   : > { %s1004_s26 = scalar_lea.sflag (%p434_p10), [#allocation6], %s1521_s28  ;;  %s1333_s7 = scalar_lea.vmem (%p434_p10), %s1019_s25, 64 }
 0x216   : > { %p1334_p11 = scmp.ne.s32.totalorder (%p434_p10), %s1019_s25, %s1333_s7  ;;  %p1849_p12 = scmp.ne.s32.totalorder (%p434_p10), %s1846_s29, 0 }
 0x217   : > { %s1412_s6 = smov (%p434_p10), [#allocation7]  }
 0x218   : > { %p1335_p13 = pnand (%p434_p10), %p1334_p11, %p1849_p12  ;;  %s1337_s16 = sshll.u32 (%p434_p10), %s1412_s6, 4  ;;  %s1338_s16 = int_to_ptr.vmem [resolvable:$false] %s1337_s16 }
 0x219   : > { %s1339_s8 = scalar_lea.vmem %s1338_s16, 128  ;;  %p1340_p1 = scmp.lt.s32.totalorder %s1019_s25, %s1338_s16 }
 0x21a   : > { %p1336_p0 = pneg %p1335_p13  ;;  %p1341_p2 = scmp.lt.s32.totalorder %s1339_s8, %s1333_s7 }
 0x21c   : > { %p1342_p3 = por %p1341_p2, %p1340_p1 }
 0x21e   : > { %p1343_p4 = pnand %p1342_p3, %p1336_p0 }
 0x220   : > { %1346 = shalt.err (!%p1343_p4)
}
 0x221   : > { %s1347_s22 = scalar_lea.hbm %s1016_s23, 64  ;;  %s1351_s9 = scalar_lea.hbm %s1843_s5, 128 }
 0x222   : > { %p1348_p7 = scmp.ne.s32.totalorder %s1016_s23, %s1347_s22  ;;  %p1352_p6 = scmp.lt.s32.totalorder %s1016_s23, %s1843_s5 }
 0x223   : > { %p1353_p10 = scmp.lt.s32.totalorder %s1351_s9, %s1347_s22 }
 0x224   : > { %p1349_p8 = pnand %p1348_p7, %p1849_p12 }
 0x225   : > { %p1354_p11 = por %p1353_p10, %p1352_p6 }
 0x226   : > { %p1350_p5 = pneg %p1349_p8 }
 0x228   : > { %p1355_p13 = pnand %p1354_p11, %p1350_p5 }
 0x22a   : > { %1358 = shalt.err (!%p1355_p13)
}
 0x22b   : > { %1234 = dma.vmem_to_hbm [thread:$0]  (%p1849_p12), %s1019_s25, 64, %s1016_s23, %s1004_s26  }
 0x22c PF: > { %s1030_s12 = sand.u32 1, %s1389_s18   ;;  %p1850_p0 = scmp.ne.s32.totalorder %s1847_s30, 0 }
 0x22d   : > { %s1031_s13 = scalar_lea.sflag [#allocation6], %s1030_s12 }
 0x22e   : > { %p1241_p1 = pnand %p1107_p9, %p1850_p0 }
 0x230   : > { %p1242_p2 = pneg %p1241_p1 }
 0x232   : > { %1384 = dma.done.wait (%p1242_p2), %s1031_s13, 64  }
 0x233   : > { %1386 = vsyncadd (%p1242_p2), %s1031_s13, 4294967232  ;;  %p16_p3 = scmp.ge.s32.totalorder %s1468_s24, 4   ;;  %s1851_s18 = smov %s1393_s19 }
 0x234   : > { %s1852_s19 = smov %s1397_s20  ;;  %s1853_s20 = smov %s1480_s27 }
 0x235   : > { %s1854_s21 = smov %s1468_s24  ;;  %18 = sbr.rel (!%p16_p3) target bundleno = 4 (0x4), region = 147 }
 0x23a   :  { %1036 = vsyncpa [#allocation5], 1 }
 0x23b   :  { %1038 = vsyncpa [#allocation5 + $0x1], 1 }
 0x23c   :  { %1039 = vsyncpa [#allocation6], 1 }
 0x23d   :  { %1041 = vsyncpa [#allocation6 + $0x1], 1 }

</bundles_post_ra>
